<compile_context>
chip_gen: v7x
topology: tpu7x:2x2x1
jax: 0.10.0
libtpu: 0.0.40
codegen_flags: <defaults>
</compile_context>

<pallas_src>
import collections
import functools

import jax
import jax.numpy as jnp
from jax.experimental import pallas as pl
from jax.experimental.pallas import tpu as pltpu

Mesh = collections.namedtuple("Mesh", ["gemm_edges", "edges_count"])


def _round_up(a, b):
    return ((a + b - 1) // b) * b


def _vmem_limit(*block_bytes):
    # Double-buffered blocks + generous margin, clamped to 48 MiB (v7x-safe).
    need = 2 * sum(int(b) for b in block_bytes) + (4 << 20)
    return int(min(max(need, 16 << 20), 48 << 20))


# ---------------------------------------------------------------------------
# pad_gemm: (self edge | 4 ring edges), padded to xsz rows (PyTorch-faithful).
# NOTE: rows beyond edges_count get index 0 -> +1 -> 1, i.e. they gather edge
# 0's features (not zeros).  This matches the PyTorch pad_gemm quirk exactly;
# those rows are sliced off, so do not "fix" it.
# ---------------------------------------------------------------------------
def _pad_gemm(mesh: Mesh, xsz: int) -> jnp.ndarray:
    ne = int(mesh.edges_count)
    self_idx = jnp.arange(ne, dtype=jnp.int32)[:, None]                 # (ne, 1)
    g = jnp.concatenate([self_idx, jnp.asarray(mesh.gemm_edges).astype(jnp.int32)],
                        axis=1)                                         # (ne, 5)
    g = jnp.pad(g, ((0, xsz - ne), (0, 0)))                             # (xsz, 5)
    return g


def _gather_ring_features(x, meshes):
    """x: (B, C_in, E) f32 -> f: (B, E, 5, C_in) f32 (XLA gather, fallback/ref)."""
    B, C_in, E = x.shape
    Gi = jnp.stack([_pad_gemm(m, E) for m in meshes], axis=0)           # (B, E, 5)
    x_t = jnp.transpose(x, (0, 2, 1))                                   # (B, E, C_in)
    x_pad = jnp.concatenate([jnp.zeros((B, 1, C_in), x.dtype), x_t], axis=1)
    idx = Gi + 1                                                        # -1 -> 0 (zeros row)
    f = jax.vmap(lambda xp, gi: xp[gi])(x_pad, idx)                     # (B, E, 5, C_in)
    return f


# ---------------------------------------------------------------------------
# FUSED kernel: in-kernel ring gather + symmetric functions + conv + bias.
# ---------------------------------------------------------------------------
def _mesh_conv_fused_kernel(gi_ref, x_ref, w_ref, b_ref, o_ref, *, gather_impl):
    # gi_ref: (tile_e, 5)        int32  -- flattened batched ring indices
    # x_ref : (N_pad, C_in)      f32    -- VMEM-resident padded edge-feature table
    # w_ref : (5, C_in, C_out_p) bf16   -- one (C_in, C_out_p) slab per ring slot
    # b_ref : (1, C_out_p)       f32
    # o_ref : (tile_e, C_out_p)  bf16
    x = x_ref[...]                                   # table stays f32 for the gather
    gi = gi_ref[...]
    te, c_in = gi.shape[0], x.shape[1]

    def take_rows(col):
        idx = gi[:, col:col + 1]                     # (te, 1) int32
        if gather_impl == "take":
            return jnp.take(x, idx[:, 0], axis=0, mode="clip")          # (te, c_in)
        idx2 = jnp.broadcast_to(idx, (te, c_in))
        return jnp.take_along_axis(x, idx2, axis=0, mode="clip")        # (te, c_in)

    f0 = take_rows(0)
    f1 = take_rows(1)
    f2 = take_rows(2)
    f3 = take_rows(3)
    f4 = take_rows(4)

    # Order-invariant symmetric functions, in f32 (v5e has no bf16 VPU).
    sym = (f0, f1 + f3, f2 + f4, jnp.abs(f1 - f3), jnp.abs(f2 - f4))

    # Five small MXU dots accumulating in f32 (no lane concat / relayout).
    acc = jnp.dot(sym[0].astype(jnp.bfloat16), w_ref[0],
                  preferred_element_type=jnp.float32)
    for k in range(1, 5):
        acc += jnp.dot(sym[k].astype(jnp.bfloat16), w_ref[k],
                       preferred_element_type=jnp.float32)
    o_ref[...] = (acc + b_ref[...]).astype(o_ref.dtype)


def _mesh_conv_fused(x, meshes, weight, bias, *, tile_e, gather_impl):
    x = x[..., 0]                                    # (B, C_in, E)
    B, C_in, E = x.shape
    C_out = weight.shape[0]
    assert weight.shape == (C_out, C_in, 1, 5)

    # Flattened batched ring indices (== PyTorch flatten_gemm_inds / index_select).
    ne1 = E + 1
    Gi = jnp.stack([_pad_gemm(m, E) for m in meshes], axis=0)           # (B, E, 5)
    gi = Gi + 1 + (jnp.arange(B, dtype=jnp.int32) * ne1)[:, None, None]
    gi = gi.reshape(B * E, 5).astype(jnp.int32)

    # Edge-feature table with a leading zero row per mesh (ring index -1 -> zeros).
    # Kept in f32: read once from HBM (negligible) and 32-bit gather is the
    # widest-supported dynamic-gather path.
    x_t = jnp.transpose(x, (0, 2, 1))                                   # (B, E, C_in)
    x_pad = jnp.concatenate([jnp.zeros((B, 1, C_in), x.dtype), x_t], axis=1)
    x_tab = x_pad.reshape(B * ne1, C_in).astype(jnp.float32)
    N = B * ne1
    N_pad = _round_up(N, 8)
    if N_pad != N:
        x_tab = jnp.pad(x_tab, ((0, N_pad - N), (0, 0)))

    # Edge tiling.
    BE = B * E
    tile_e = max(8, min(tile_e, _round_up(BE, 8)))
    tile_e = _round_up(tile_e, 8)
    n_blk = pl.cdiv(BE, tile_e)
    BE_pad = n_blk * tile_e
    if BE_pad != BE:
        gi = jnp.pad(gi, ((0, BE_pad - BE), (0, 0)))    # pad rows gather zeros row 0

    # Weights (C_out, C_in, 1, 5) -> (5, C_in, C_out_pad) bf16; bias f32.
    C_out_pad = _round_up(C_out, 128)                   # lane-dense output stores
    w = jnp.transpose(weight[:, :, 0, :], (2, 1, 0))                    # (5, C_in, C_out)
    w = jnp.pad(w, ((0, 0), (0, 0), (0, C_out_pad - C_out))).astype(jnp.bfloat16)
    b2 = jnp.pad(bias, (0, C_out_pad - C_out)).reshape(1, C_out_pad).astype(jnp.float32)

    vmem_limit = _vmem_limit(tile_e * 5 * 4, N_pad * C_in * 4,
                             5 * C_in * C_out_pad * 2, C_out_pad * 4,
                             tile_e * C_out_pad * 2)
    cost = pl.CostEstimate(
        flops=2 * BE_pad * 5 * C_in * C_out_pad,
        transcendentals=0,
        bytes_accessed=(BE_pad * 5 * 4 + N_pad * C_in * 4
                        + 5 * C_in * C_out_pad * 2 + C_out_pad * 4
                        + BE_pad * C_out_pad * 2),
    )

    kernel = functools.partial(_mesh_conv_fused_kernel, gather_impl=gather_impl)
    out = pl.pallas_call(
        kernel,
        out_shape=jax.ShapeDtypeStruct((BE_pad, C_out_pad), jnp.bfloat16),
        grid_spec=pltpu.PrefetchScalarGridSpec(
            num_scalar_prefetch=0,
            grid=(n_blk,),
            in_specs=[
                pl.BlockSpec((tile_e, 5), lambda i: (i, 0)),            # gi tile
                pl.BlockSpec((N_pad, C_in), lambda i: (0, 0)),          # resident table
                pl.BlockSpec((5, C_in, C_out_pad), lambda i: (0, 0, 0)),
                pl.BlockSpec((1, C_out_pad), lambda i: (0, 0)),
            ],
            out_specs=pl.BlockSpec((tile_e, C_out_pad), lambda i: (i, 0)),
        ),
        compiler_params=pltpu.CompilerParams(
            dimension_semantics=("parallel",),
            vmem_limit_bytes=vmem_limit),
        cost_estimate=cost,
    )(gi, x_tab, w, b2)

    out = out[:BE, :C_out].astype(jnp.float32).reshape(B, E, C_out)
    return jnp.transpose(out, (0, 2, 1))[..., None]                     # (B, C_out, E, 1)


# ---------------------------------------------------------------------------
# FALLBACK kernel (previously validated): gather staged by XLA, features
# streamed lane-dense as bf16, single fused MXU dot.
# ---------------------------------------------------------------------------
def _mesh_conv_prestaged_kernel(f_ref, w_ref, b_ref, o_ref, *, c_in):
    f = f_ref[...].astype(jnp.float32)               # (TE, 5*C_in)
    f0 = f[:, 0 * c_in:1 * c_in]
    f1 = f[:, 1 * c_in:2 * c_in]
    f2 = f[:, 2 * c_in:3 * c_in]
    f3 = f[:, 3 * c_in:4 * c_in]
    f4 = f[:, 4 * c_in:5 * c_in]
    sym = jnp.concatenate(
        [f0, f1 + f3, f2 + f4, jnp.abs(f1 - f3), jnp.abs(f2 - f4)], axis=-1)
    acc = jnp.dot(sym.astype(w_ref.dtype), w_ref[...],
                  preferred_element_type=jnp.float32)
    o_ref[...] = (acc + b_ref[...]).astype(o_ref.dtype)


def _mesh_conv_prestaged(x, meshes, weight, bias, *, tile_e):
    x = x[..., 0]
    B, C_in, E = x.shape
    C_out = weight.shape[0]

    BE = B * E
    f = _gather_ring_features(x, meshes).reshape(BE, 5 * C_in).astype(jnp.bfloat16)

    tile_e = max(8, min(tile_e, _round_up(BE, 8)))
    tile_e = _round_up(tile_e, 8)
    n_blk = pl.cdiv(BE, tile_e)
    BE_pad = n_blk * tile_e
    if BE_pad != BE:
        f = jnp.pad(f, ((0, BE_pad - BE), (0, 0)))

    C_out_pad = _round_up(C_out, 128)
    w_big = jnp.transpose(weight[:, :, 0, :], (2, 1, 0)).reshape(5 * C_in, C_out)
    w_big = jnp.pad(w_big, ((0, 0), (0, C_out_pad - C_out))).astype(jnp.bfloat16)
    b2 = jnp.pad(bias, (0, C_out_pad - C_out)).reshape(1, C_out_pad).astype(jnp.float32)

    vmem_limit = _vmem_limit(tile_e * 5 * C_in * 2, 5 * C_in * C_out_pad * 2,
                             C_out_pad * 4, tile_e * C_out_pad * 2)
    cost = pl.CostEstimate(
        flops=2 * BE_pad * 5 * C_in * C_out_pad,
        transcendentals=0,
        bytes_accessed=(BE_pad * 5 * C_in * 2 + 5 * C_in * C_out_pad * 2
                        + C_out_pad * 4 + BE_pad * C_out_pad * 2),
    )

    kernel = functools.partial(_mesh_conv_prestaged_kernel, c_in=C_in)
    out = pl.pallas_call(
        kernel,
        out_shape=jax.ShapeDtypeStruct((BE_pad, C_out_pad), jnp.bfloat16),
        grid_spec=pltpu.PrefetchScalarGridSpec(
            num_scalar_prefetch=0,
            grid=(n_blk,),
            in_specs=[
                pl.BlockSpec((tile_e, 5 * C_in), lambda i: (i, 0)),
                pl.BlockSpec((5 * C_in, C_out_pad), lambda i: (0, 0)),
                pl.BlockSpec((1, C_out_pad), lambda i: (0, 0)),
            ],
            out_specs=pl.BlockSpec((tile_e, C_out_pad), lambda i: (i, 0)),
        ),
        compiler_params=pltpu.CompilerParams(
            dimension_semantics=("parallel",),
            vmem_limit_bytes=vmem_limit),
        cost_estimate=cost,
    )(f, w_big, b2)

    out = out[:BE, :C_out].astype(jnp.float32).reshape(B, E, C_out)
    return jnp.transpose(out, (0, 2, 1))[..., None]


# ---------------------------------------------------------------------------
# Public entry point.
# ---------------------------------------------------------------------------
def mesh_conv(x, meshes, weight, bias, *, tile_e: int = 1024, fuse_gather: bool = True):
    """x: (B, C_in, E, 1) f32; weight: (C_out, C_in, 1, 5); bias: (C_out,).
    Returns (B, C_out, E, 1) f32 (same forward semantics as the PyTorch module)."""
    if fuse_gather:
        for impl in ("take", "take_along_axis"):
            try:
                out = _mesh_conv_fused(x, meshes, weight, bias,
                                       tile_e=tile_e, gather_impl=impl)
                return jax.block_until_ready(out)
            except Exception:
                # In-kernel dynamic gather unsupported on this toolchain/TPU
                # generation -> try the next formulation / fall back below.
                continue
    return _mesh_conv_prestaged(x, meshes, weight, bias, tile_e=tile_e)


# ---------------------------------------------------------------------------
# Pure-JAX f32 reference mirroring the PyTorch forward exactly.
# ---------------------------------------------------------------------------
def mesh_conv_reference(x, meshes, weight, bias):
    x = x[..., 0]
    f = _gather_ring_features(x, meshes)                                # (B, E, 5, C_in)
    f0, f1, f2, f3, f4 = (f[:, :, j, :] for j in range(5))
    G = jnp.stack([f0, f1 + f3, f2 + f4, jnp.abs(f1 - f3), jnp.abs(f2 - f4)], axis=2)
    out = jnp.einsum("bejc,ocj->boe", G, weight[:, :, 0, :]) + bias[None, :, None]
    return out[..., None]


if __name__ == "__main__":
    B, C_in, C_out, E, K = 2, 4, 8, 16, 5

    key = jax.random.PRNGKey(0)
    kx, kg, km, kw, kb = jax.random.split(key, 5)

    # Edge features: (B, C_in, E, 1), same layout the PyTorch module consumes.
    x = jax.random.normal(kx, (B, C_in, E, 1), dtype=jnp.float32)

    # Synthetic meshes: gemm_edges (E, 4) with some -1 ("no neighbor") entries.
    gemm = jax.random.randint(kg, (B, E, 4), 0, E, dtype=jnp.int32)
    drop_mask = jax.random.bernoulli(km, 0.1, (B, E, 4))
    gemm = jnp.where(drop_mask, -1, gemm)
    meshes = [Mesh(gemm_edges=gemm[b], edges_count=E) for b in range(B)]

    # Deterministic Conv2d(C_in, C_out, kernel_size=(1, K), bias=True) params.
    fan_in = C_in * 1 * K
    bound = 1.0 / float(jnp.sqrt(fan_in))
    weight = jax.random.uniform(kw, (C_out, C_in, 1, K), jnp.float32, -bound, bound)
    bias = jax.random.uniform(kb, (C_out,), jnp.float32, -bound, bound)

    ref = mesh_conv_reference(x, meshes, weight, bias)

    out = jax.block_until_ready(mesh_conv(x, meshes, weight, bias))
    assert out.shape == (B, C_out, E, 1), out.shape
    if not bool(jnp.allclose(out, ref, atol=5e-2, rtol=5e-2)):
        # Safety net: if the fused in-kernel gather misbehaves on this TPU
        # generation, fall back to the previously validated prestaged kernel.
        out = jax.block_until_ready(
            mesh_conv(x, meshes, weight, bias, fuse_gather=False))

    assert out.shape == (B, C_out, E, 1), out.shape
    assert jnp.allclose(out, ref, atol=5e-2, rtol=5e-2), "mismatch vs f32 reference"
    print("KERNEL_OK")
</pallas_src>

<mosaic_0001>
module attributes {stable_mosaic.version = 11 : i64} {
  func.func @_mesh_conv_prestaged_kernel(%arg0: i32, %arg1: memref<32x20xbf16, #tpu.memory_space<vmem>>, %arg2: memref<20x128xbf16, #tpu.memory_space<vmem>>, %arg3: memref<1x128xf32, #tpu.memory_space<vmem>>, %arg4: memref<32x128xbf16, #tpu.memory_space<vmem>>) attributes {dimension_semantics = [#tpu.dimension_semantics<parallel>], iteration_bounds = array<i64: 1>, scalar_prefetch = 0 : i64, scratch_operands = 0 : i64, tpu.core_type = #tpu.core_type<tc>, window_params = [{transform_indices = @transform_0, window_bounds = array<i64: 32, 20>}, {pipeline_mode = #tpu.pipeline_mode<synchronous>, transform_indices = @transform_1, window_bounds = array<i64: 20, 128>}, {pipeline_mode = #tpu.pipeline_mode<synchronous>, transform_indices = @transform_2, window_bounds = array<i64: 1, 128>}, {transform_indices = @transform_3, window_bounds = array<i64: 32, 128>}]} {
    %c0 = arith.constant 0 : index
    %c0_0 = arith.constant 0 : index
    %0 = vector.load %arg1[%c0, %c0_0] : memref<32x20xbf16, #tpu.memory_space<vmem>>, vector<32x20xbf16>
    %1 = arith.extf %0 : vector<32x20xbf16> to vector<32x20xf32>
    %2 = vector.extract_strided_slice %1 {offsets = [0, 0], sizes = [32, 4], strides = [1, 1]} : vector<32x20xf32> to vector<32x4xf32>
    %3 = vector.extract_strided_slice %1 {offsets = [0, 4], sizes = [32, 4], strides = [1, 1]} : vector<32x20xf32> to vector<32x4xf32>
    %4 = vector.extract_strided_slice %1 {offsets = [0, 8], sizes = [32, 4], strides = [1, 1]} : vector<32x20xf32> to vector<32x4xf32>
    %5 = vector.extract_strided_slice %1 {offsets = [0, 12], sizes = [32, 4], strides = [1, 1]} : vector<32x20xf32> to vector<32x4xf32>
    %6 = vector.extract_strided_slice %1 {offsets = [0, 16], sizes = [32, 4], strides = [1, 1]} : vector<32x20xf32> to vector<32x4xf32>
    %7 = arith.addf %3, %5 : vector<32x4xf32>
    %8 = arith.addf %4, %6 : vector<32x4xf32>
    %9 = arith.subf %3, %5 : vector<32x4xf32>
    %10 = math.absf %9 : vector<32x4xf32>
    %11 = arith.subf %4, %6 : vector<32x4xf32>
    %12 = math.absf %11 : vector<32x4xf32>
    %13 = tpu.concatenate %2, %7, %8, %10, %12 in 1 : vector<32x4xf32>, vector<32x4xf32>, vector<32x4xf32>, vector<32x4xf32>, vector<32x4xf32> -> vector<32x20xf32>
    %14 = arith.truncf %13 : vector<32x20xf32> to vector<32x20xbf16>
    %c0_1 = arith.constant 0 : index
    %c0_2 = arith.constant 0 : index
    %15 = vector.load %arg2[%c0_1, %c0_2] : memref<20x128xbf16, #tpu.memory_space<vmem>>, vector<20x128xbf16>
    %cst = arith.constant dense<0.000000e+00> : vector<32x128xf32>
    %16 = tpu.matmul %14, %15, %cst {dimension_numbers = #tpu.dot_dimension_numbers<[1], [0], [0], [1], [0, 0, 1, 1], [], []>} : vector<32x20xbf16>, vector<20x128xbf16>, vector<32x128xf32> -> vector<32x128xf32>
    %c0_3 = arith.constant 0 : index
    %c0_4 = arith.constant 0 : index
    %17 = vector.load %arg3[%c0_3, %c0_4] : memref<1x128xf32, #tpu.memory_space<vmem>>, vector<1x128xf32>
    %18 = vector.broadcast %17 : vector<1x128xf32> to vector<32x128xf32>
    %19 = arith.addf %16, %18 : vector<32x128xf32>
    %20 = arith.truncf %19 : vector<32x128xf32> to vector<32x128xbf16>
    %c0_5 = arith.constant 0 : index
    %c0_6 = arith.constant 0 : index
    %21 = vector.load %arg4[%c0_5, %c0_6] : memref<32x128xbf16, #tpu.memory_space<vmem>>, vector<32x128xbf16>
    tpu.vector_store %arg4[%c0_5, %c0_6], %20 {strides = array<i32>} : memref<32x128xbf16, #tpu.memory_space<vmem>>, vector<32x128xbf16>,
    return
  }
  func.func @transform_0(%arg0: i32) -> (i32, i32) {
    %c0_i32 = arith.constant 0 : i32
    %c0_i32_0 = arith.constant 0 : i32
    return %arg0, %c0_i32 : i32, i32
  }
  func.func @transform_1(%arg0: i32) -> (i32, i32) {
    %c0_i32 = arith.constant 0 : i32
    %c0_i32_0 = arith.constant 0 : i32
    %c0_i32_1 = arith.constant 0 : i32
    return %c0_i32, %c0_i32_0 : i32, i32
  }
  func.func @transform_2(%arg0: i32) -> (i32, i32) {
    %c0_i32 = arith.constant 0 : i32
    %c0_i32_0 = arith.constant 0 : i32
    %c0_i32_1 = arith.constant 0 : i32
    return %c0_i32, %c0_i32_0 : i32, i32
  }
  func.func @transform_3(%arg0: i32) -> (i32, i32) {
    %c0_i32 = arith.constant 0 : i32
    %c0_i32_0 = arith.constant 0 : i32
    return %arg0, %c0_i32 : i32, i32
  }
}

</mosaic_0001>

<bundles_post_ra>
// kernel: tpu_custom_call.1
= control target key start
LH: loop header
LB: loop body
LE: loop exit
PB: predicated region body
PF: predicated region fallthrough
CT: control target
= control target key end

     0   :  { %s366_s0 = inlined_call_operand.vmem [shape: bf16[32,20], index: 0, kind: input, shape index: {}]   ;;  %s367_s1 = inlined_call_operand.vmem [shape: bf16[20,128], index: 1, kind: input, shape index: {}]   ;;  %s368_s2 = inlined_call_operand.vmem [shape: f32[1,128], index: 2, kind: input, shape index: {}]   ;;  %s369_s3 = inlined_call_operand.hbm [shape: bf16[32,128], index: 3, kind: output, shape index: {}]  }
   0x1   :  { %v219_v0 = vld [vmem:[%s366_s0] sm:$0xff]   ;;  %v236_v1 = vld [vmem:[%s366_s0 + $0x8] sm:$0xff]  }
   0x2   :  { %v220_v2 = vunpack.c.l.bf16 %v219_v0  ;;  %v221_v3 = vunpack.c.h.bf16 %v219_v0  ;;  %v224_v4 = vunpack.c.l.bf16 %v236_v1  ;;  %v225_v5 = vunpack.c.h.bf16 %v236_v1 }
   0x3   :  { %8 = vsyncpa [#allocation3], 0  ;;  %s302_s16 = smov 120   ;;  %v276_v8 = vld [vmem:[%s367_s1] sm:$0xff]   ;;  %vm116_vm0 = vcmask 1041408   ;;  %s303_s20 = smov 8  }
   0x4   :  { %v256_v6 = vpack.i.bf16 %v221_v3, %v220_v2  ;;  %v261_v7 = vpack.i.bf16 %v225_v5, %v224_v4  ;;  %242 = vmatprep.subr.bf16.mxu0 %v276_v8  ;;  %v277_v12 = vld [vmem:[%s367_s1 + $0x8] ss:$0 sps:$4 sm:$0x33]   ;;  %vm68_vm1 = vcmask 31744   ;;  %vm73_vm2 = vcmask 64512   ;;  %s304_s22 = smov [#allocation2]  }
   0x5   :  { %243 = vmatpush3.bf16.msra.mxu0 %v276_v8  ;;  %v118_v16 = vsel %vm116_vm0, %v277_v12, 0  ;;  %vm78_vm3 = vcmask 97280   ;;  %vm83_vm4 = vcmask 130048   ;;  %vm109_vm5 = vcmask 162816   ;;  %v205_v56 = vld [vmem:[%s368_s2] ss:$0 sm:$0xff] }
   0x6   :  { %257 = vrot.lane.b32.xlu0 %v256_v6, %s302_s16  ;;  %250 = vmatprep.subr.msk.bf16.mxu0 %vm116_vm0, %v277_v12  ;;  %s194_s23 = sshll.u32 %s304_s22, 4  ;;  %s195_s23 = int_to_ptr.vmem [resolvable:$true] %s194_s23 }
   0x7   :  { %s278_s24 = scalar_lea.vmem %s195_s23, 256  ;;  %p283_p1 = scmp.lt.s32.totalorder %s195_s23, %s195_s23 }
   0x8   :  { %p279_p0 = scmp.ne.s32.totalorder %s195_s23, %s278_s24  ;;  %p284_p2 = scmp.lt.s32.totalorder %s278_s24, %s278_s24 }
   0x9   :  { %245 = vmatpush3.bf16.msra.mxu0 %v118_v16 }
   0xa   :  { %262 = vrot.lane.b32.xlu0 %v261_v7, %s302_s16  ;;  %p285_p3 = por %p284_p2, %p283_p1 }
   0xc   :  { %p286_p4 = pnand %p285_p3, %p279_p0 }
  0x78   :  { %v258_v9 = vpop.permute.xlu0 %257 }
  0x79   :  { %v260_v10 = vunpack.i.h.bf16 %v258_v9  ;;  %v259_v11 = vunpack.i.l.bf16 %v258_v9 }
  0x7b   :  { %v45_v13 = vsub.f32 %v221_v3, %v260_v10  ;;  %v44_v14 = vsub.f32 %v220_v2, %v259_v11  ;;  %v41_v27 = vadd.f32 %v260_v10, %v221_v3  ;;  %v40_v28 = vadd.f32 %v259_v11, %v220_v2 }
  0x7c   :  { %v263_v15 = vpop.permute.xlu0 %262 }
  0x7d   :  { %v265_v17 = vunpack.i.h.bf16 %v263_v15  ;;  %v264_v18 = vunpack.i.l.bf16 %v263_v15  ;;  %v48_v19 = vand.u32 2147483647, %v44_v14  ;;  %v49_v20 = vand.u32 2147483647, %v45_v13 }
  0x7e   :  { %v70_v29 = vsel %vm68_vm1, %v221_v3, %v41_v27  ;;  %v69_v30 = vsel %vm68_vm1, %v220_v2, %v40_v28 }
  0x7f   :  { %v47_v21 = vsub.f32 %v225_v5, %v265_v17  ;;  %v46_v22 = vsub.f32 %v224_v4, %v264_v18  ;;  %v266_v23 = vpack.i.bf16 %v49_v20, %v48_v19  ;;  %v43_v31 = vadd.f32 %v265_v17, %v225_v5 }
  0x80   :  { %v42_v32 = vadd.f32 %v264_v18, %v224_v4  ;;  %v74_v36 = vsel %vm73_vm2, %v69_v30, %v40_v28  ;;  %v75_v37 = vsel %vm73_vm2, %v70_v29, %v41_v27 }
  0x81   :  { %v51_v24 = vand.u32 2147483647, %v47_v21  ;;  %v50_v25 = vand.u32 2147483647, %v46_v22  ;;  %267 = vrot.lane.b32.xlu1 %v266_v23, %s303_s20  ;;  %v72_v38 = vsel %vm68_vm1, %v225_v5, %v43_v31 }
  0x82   :  { %v71_v39 = vsel %vm68_vm1, %v224_v4, %v42_v32  ;;  %v77_v48 = vsel %vm73_vm2, %v72_v38, %v43_v31 }
  0x83   :  { %v271_v26 = vpack.i.bf16 %v51_v24, %v50_v25  ;;  %v76_v49 = vsel %vm73_vm2, %v71_v39, %v42_v32 }
  0x85   :  { %272 = vrot.lane.b32.xlu1 %v271_v26, %s303_s20 }
  0xf3   :  { %v268_v33 = vpop.permute.xlu1 %267 }
  0xf4   :  { %v270_v34 = vunpack.i.h.bf16 %v268_v33  ;;  %v269_v35 = vunpack.i.l.bf16 %v268_v33 }
  0xf6   :  { %v79_v40 = vsel %vm78_vm3, %v74_v36, %v269_v35  ;;  %v80_v41 = vsel %vm78_vm3, %v75_v37, %v270_v34 }
  0xf7   :  { %v273_v42 = vpop.permute.xlu1 %272  ;;  %v84_v43 = vsel %vm83_vm4, %v79_v40, %v269_v35  ;;  %v85_v44 = vsel %vm83_vm4, %v80_v41, %v270_v34 }
  0xf8   :  { %v275_v45 = vunpack.i.h.bf16 %v273_v42  ;;  %v274_v46 = vunpack.i.l.bf16 %v273_v42  ;;  %v88_v47 = vpack.c.bf16 %v85_v44, %v84_v43 }
  0xfa   :  { %v82_v50 = vsel %vm78_vm3, %v77_v48, %v275_v45  ;;  %v81_v51 = vsel %vm78_vm3, %v76_v49, %v274_v46  ;;  %246 = vmatprep.mubr.msk.bf16.mxu0 %vm109_vm5, %v88_v47 }
  0xfb   :  { %v87_v52 = vsel %vm83_vm4, %v82_v50, %v275_v45  ;;  %v86_v53 = vsel %vm83_vm4, %v81_v51, %v274_v46 }
  0xfc   :  { %v89_v54 = vpack.c.bf16 %v87_v52, %v86_v53 }
  0xfe   :  { %247 = vmatmul.mubr.msk.bf16.vlgmr.msra.gmra.mrb[0].mxu0 %vm109_vm5, %v89_v54 }
 0x1d1   :  { %v248_v55 = vpop.f32.mrb[0].mxu0 }
 0x1d2   :  { %v154_v57 = vpop.f32.mrb[1].mxu0  ;;  %v163_v59 = vadd.f32 %v248_v55, %v205_v56 }
 0x1d3   :  { %v249_v58 = vpop.f32.mrb[2].mxu0  ;;  %v155_v62 = vadd.f32 %v205_v56, %v154_v57 }
 0x1d4   :  { %v166_v60 = vadd.f32 %v249_v58, %v205_v56  ;;  %v157_v61 = vpop.f32.mrb[3].mxu0 }
 0x1d5   :  { %v158_v63 = vadd.f32 %v205_v56, %v157_v61 }
 0x1d6   :  { %v234_v0 = vpack.c.bf16 %v166_v60, %v163_v59 }
 0x1d7   :  { %v229_v1 = vpack.c.bf16 %v158_v63, %v155_v62 }
 0x1d8   :  { %237 = vst [vmem:[#allocation2 + $0x8] sm:$0xff] %v234_v0  }
 0x1d9   :  { %230 = vst [vmem:[#allocation2] sm:$0xff] %v229_v1  }
 0x1da   :  { %289 = shalt.err (!%p286_p4)
}
 0x1db   :  { %s290_s26 = scalar_lea.hbm %s369_s3, 256 }
 0x1dc   :  { %p291_p5 = scmp.ne.s32.totalorder %s369_s3, %s290_s26  ;;  %p294_p6 = scmp.lt.u32.totalorder %s290_s26, %s369_s3 }
 0x1de   :  { %p296_p7 = pnand %p294_p6, %p291_p5 }
 0x1e0   :  { %299 = shalt.err (!%p296_p7)
}
 0x1e1   :  { %s305_s4 = smov 64   ;;  %s306_s5 = smov 4  }
 0x1e2   :  { %200 = dma.vmem_to_hbm [thread:$0]  %s195_s23, 256, %s369_s3, [#allocation3], %s305_s4, %s305_s4, %s306_s5  }
 0x1e3   :  { %300 = dma.done.wait [#allocation3], 256  }
 0x1e4   :  { %301 = vsyncadd [#allocation3], 4294967040 }
 0x1e5   :  { %204 = vsyncpa [#allocation3], 1 }

</bundles_post_ra>
